<compile_context>
chip_gen: v7x
topology: tpu7x:2x2x1
jax: 0.10.0
libtpu: 0.0.40
codegen_flags: <defaults>
</compile_context>

<pallas_src>
import functools

import jax
import jax.numpy as jnp
from jax import lax
from jax.experimental import pallas as pl
from jax.experimental.pallas import tpu as pltpu

EPS = 1e-5
_FUSED_F32_BYTES = 4 * 1024 * 1024  # fused path if padded f32 footprint <= this


def _round_up(a, b):
    return (a + b - 1) // b * b


def _sublane_multiple(dtype):
    # 8 for f32, 16 for bf16, 32 for int8/fp8.
    return max(8, 32 // jnp.dtype(dtype).itemsize)


def _vmem_config():
    """Returns (physical_vmem, per-block byte budget, scoped vmem_limit_bytes)."""
    try:
        cap = int(pltpu.get_tpu_info().vmem_capacity_bytes)
    except Exception:
        cap = 64 * 1024 * 1024
    if cap < 32 * 1024 * 1024:  # defensive: bogus / missing info
        cap = 64 * 1024 * 1024
    if cap >= 100 * 1024 * 1024:          # v5e / v6e: 128 MiB physical VMEM
        return cap, 8 * 1024 * 1024, 96 * 1024 * 1024
    return cap, 4 * 1024 * 1024, 48 * 1024 * 1024   # v7x (64 MiB) / unknown


def _pick_tile_hw(hw_pad, c_pad, itemsize, block_budget):
    """Largest 128-multiple lane tile dividing hw_pad within the block budget."""
    max_lanes = max(128, (block_budget // (c_pad * itemsize)) // 128 * 128)
    best = 128
    t = 128
    limit = min(hw_pad, max_lanes)
    while t <= limit:
        if hw_pad % t == 0:
            best = t
        t += 128
    return best


# ----------------------------- kernels ---------------------------------------


def _fused_kernel(x_ref, gamma_ref, beta_ref, o_ref, *, count):
    """Whole-activation-in-VMEM path: exact two-pass variance, single x read."""
    n = x_ref.shape[0]
    c = x_ref.shape[1]
    hw = x_ref.shape[2]
    inv = jnp.float32(1.0 / count)

    def sum_body(i, acc):
        return acc + x_ref[i].astype(jnp.float32)          # (C, HW)

    s = lax.fori_loop(0, n, sum_body, jnp.zeros((c, hw), jnp.float32))
    mean = jnp.sum(s, axis=1, keepdims=True) * inv          # (C, 1)

    def var_body(i, acc):
        d = x_ref[i].astype(jnp.float32) - mean
        return acc + d * d

    v = lax.fori_loop(0, n, var_body, jnp.zeros((c, hw), jnp.float32))
    var = jnp.sum(v, axis=1, keepdims=True) * inv            # (C, 1)

    inv_std = lax.rsqrt(var + EPS)                           # EUP, tiny
    scale = gamma_ref[...].astype(jnp.float32) * inv_std     # (C, 1)
    bias = beta_ref[...].astype(jnp.float32) - mean * scale  # (C, 1)

    @pl.loop(0, n)
    def _(i):
        xi = x_ref[i].astype(jnp.float32)
        o_ref[i] = (xi * scale + bias).astype(o_ref.dtype)


def _stats_kernel(x_ref, sum_ref, sq_ref, *, lane_block, lane_groups):
    """Phase 1: lane-parallel per-channel partial sum / sum-of-squares (per n)."""
    t = pl.program_id(1)

    @pl.when(t == 0)
    def _init():
        sum_ref[...] = jnp.zeros_like(sum_ref)
        sq_ref[...] = jnp.zeros_like(sq_ref)

    def body(g, carry):
        s, q = carry
        off = pl.multiple_of(g * lane_block, lane_block)
        xs = x_ref[0, :, pl.ds(off, lane_block)].astype(jnp.float32)  # (C, LB)
        return s + xs, q + xs * xs                                     # VPU only

    s, q = lax.fori_loop(0, lane_groups, body, (sum_ref[0], sq_ref[0]))
    sum_ref[0] = s
    sq_ref[0] = q


def _normalize_kernel(x_ref, scale_ref, bias_ref, o_ref, *, lane_block, lane_groups):
    """Phase 2: out = x * scale + bias on lane-dense slabs (pure VPU + DMA)."""
    s = scale_ref[...]   # (C, LB) f32 — pre-broadcast, no per-step XLU broadcast
    b = bias_ref[...]

    @pl.loop(0, lane_groups)
    def _(g):
        off = pl.multiple_of(g * lane_block, lane_block)
        xs = x_ref[0, :, pl.ds(off, lane_block)].astype(jnp.float32)
        o_ref[0, :, pl.ds(off, lane_block)] = (xs * s + b).astype(o_ref.dtype)


# ----------------------------- wrapper ----------------------------------------


def my_batch_norm_2d(x, gamma, beta, *, block_bytes=None, force_two_pass=False):
    """x: (N, C, H, W); gamma, beta: (1, C, 1, 1).  Batch-stat BN forward."""
    N, C, H, W = x.shape
    HW = H * W
    count = N * HW
    itemsize = jnp.dtype(x.dtype).itemsize
    c_pad = _round_up(C, _sublane_multiple(x.dtype))

    # TODO(synk): the `first_k_oup` dynamic-channel attribute hack always resolves
    # to the full channel count here (the module's `else` branch).

    cap, block_budget, vmem_limit = _vmem_config()
    if block_bytes is not None:
        block_budget = block_bytes

    x3 = x.reshape(N, C, HW)
    gamma2d = gamma.reshape(C, 1).astype(jnp.float32)
    beta2d = beta.reshape(C, 1).astype(jnp.float32)

    hw_pad128 = _round_up(HW, 128)
    fused_f32_bytes = N * c_pad * hw_pad128 * 4

    # ---- small-input fast path: one fused kernel, single read of x -------------
    if fused_f32_bytes <= _FUSED_F32_BYTES and not force_two_pass:
        cost = pl.CostEstimate(flops=7 * N * C * HW, transcendentals=C,
                               bytes_accessed=2 * N * C * HW * itemsize)
        out3 = pl.pallas_call(
            functools.partial(_fused_kernel, count=count),
            out_shape=jax.ShapeDtypeStruct((N, C, HW), x.dtype),
            grid_spec=pltpu.PrefetchScalarGridSpec(
                num_scalar_prefetch=0,
                grid=(1,),
                in_specs=[pl.BlockSpec((N, C, HW), lambda i: (0, 0, 0)),
                          pl.BlockSpec((C, 1), lambda i: (0, 0)),
                          pl.BlockSpec((C, 1), lambda i: (0, 0))],
                out_specs=pl.BlockSpec((N, C, HW), lambda i: (0, 0, 0)),
            ),
            compiler_params=pltpu.CompilerParams(
                dimension_semantics=("arbitrary",),
                vmem_limit_bytes=vmem_limit),
            cost_estimate=cost,
        )(x3, gamma2d, beta2d)
        return out3.reshape(N, C, H, W)

    # ---- large-input two-pass path ----------------------------------------------
    # Keep every block lane-dense: zero-pad the spatial axis to a 128 multiple
    # (zeros are neutral for the sums; `count` uses the real extent).
    if HW % 128 != 0:
        x3 = jnp.pad(x3, ((0, 0), (0, 0), (0, hw_pad128 - HW)))
    HWp = hw_pad128

    thw = _pick_tile_hw(HWp, c_pad, itemsize, block_budget)
    # Slab width for the in-kernel lane loop (amortizes loop overhead).
    lane_block = 512 if thw % 512 == 0 else (256 if thw % 256 == 0 else 128)
    lane_groups = thw // lane_block
    grid = (N, HWp // thw)

    # Ensure the scoped limit covers the double-buffered phase-2 working set
    # (2 in + 2 out blocks) even for very large channel counts.
    block_actual = c_pad * thw * itemsize
    vmem_limit = min(max(vmem_limit, 5 * block_actual + (4 << 20)),
                     int(cap * 0.85))

    x_spec = pl.BlockSpec((1, C, thw), lambda n, t: (n, 0, t))
    part_spec = pl.BlockSpec((1, C, lane_block), lambda n, t: (n, 0, 0))

    # ---- phase 1: per-(n, c) lane-parallel partial sums -------------------------
    stats_cost = pl.CostEstimate(
        flops=3 * N * C * HWp, transcendentals=0,
        bytes_accessed=N * C * HWp * itemsize + 2 * N * C * lane_block * 4)
    psum, psq = pl.pallas_call(
        functools.partial(_stats_kernel, lane_block=lane_block,
                          lane_groups=lane_groups),
        out_shape=(jax.ShapeDtypeStruct((N, C, lane_block), jnp.float32),
                   jax.ShapeDtypeStruct((N, C, lane_block), jnp.float32)),
        grid_spec=pltpu.PrefetchScalarGridSpec(
            num_scalar_prefetch=0, grid=grid,
            in_specs=[x_spec],
            out_specs=(part_spec, part_spec)),
        compiler_params=pltpu.CompilerParams(
            dimension_semantics=("parallel", "arbitrary"),
            vmem_limit_bytes=vmem_limit),
        cost_estimate=stats_cost,
    )(x3)

    # Tiny finalize in plain XLA: combine lane/N partials, fold gamma/beta.
    sum_c = jnp.sum(psum, axis=(0, 2))
    sq_c = jnp.sum(psq, axis=(0, 2))
    inv_count = jnp.float32(1.0 / count)
    mean = sum_c * inv_count
    # NOTE: E[x^2] - mean^2 in f32; lane/N-parallel partials keep rounding growth
    # modest, but extremely un-centered activations can still lose precision.
    var = jnp.maximum(sq_c * inv_count - mean * mean, 0.0)
    inv_std = lax.rsqrt(var + EPS)
    scale_c = gamma2d[:, 0] * inv_std
    bias_c = beta2d[:, 0] - mean * scale_c
    scale_lb = jnp.broadcast_to(scale_c[:, None], (C, lane_block)).astype(jnp.float32)
    bias_lb = jnp.broadcast_to(bias_c[:, None], (C, lane_block)).astype(jnp.float32)

    # ---- phase 2: normalize (elementwise, fully parallel grid) ------------------
    vec_spec = pl.BlockSpec((C, lane_block), lambda n, t: (0, 0))
    norm_cost = pl.CostEstimate(
        flops=2 * N * C * HWp, transcendentals=0,
        bytes_accessed=2 * N * C * HWp * itemsize + 2 * C * lane_block * 4)
    out3 = pl.pallas_call(
        functools.partial(_normalize_kernel, lane_block=lane_block,
                          lane_groups=lane_groups),
        out_shape=jax.ShapeDtypeStruct((N, C, HWp), x.dtype),
        grid_spec=pltpu.PrefetchScalarGridSpec(
            num_scalar_prefetch=0, grid=grid,
            in_specs=[x_spec, vec_spec, vec_spec],
            out_specs=x_spec),
        compiler_params=pltpu.CompilerParams(
            dimension_semantics=("parallel", "parallel"),
            vmem_limit_bytes=vmem_limit),
        cost_estimate=norm_cost,
    )(x3, scale_lb, bias_lb)

    if HWp != HW:
        out3 = out3[:, :, :HW]
    return out3.reshape(N, C, H, W)


def _reference(x, gamma, beta):
    mean = jnp.mean(x, axis=(0, 2, 3), keepdims=True)
    var = jnp.mean((x - mean) ** 2, axis=(0, 2, 3), keepdims=True)
    return gamma * (x - mean) / jnp.sqrt(var + EPS) + beta


if __name__ == "__main__":
    key = jax.random.PRNGKey(0)
    kx, kg, kb, kx2 = jax.random.split(key, 4)

    # Module-consistent small shapes: batch=2, channels=4, spatial=16.
    N, C, H, W = 2, 4, 16, 16
    x = jax.random.normal(kx, (N, C, H, W), dtype=jnp.float32)
    gamma = jnp.ones((1, C, 1, 1), jnp.float32) + 0.1 * jax.random.normal(kg, (1, C, 1, 1))
    beta = jnp.zeros((1, C, 1, 1), jnp.float32) + 0.1 * jax.random.normal(kb, (1, C, 1, 1))

    # Fused (small-input) path.
    out = jax.block_until_ready(my_batch_norm_2d(x, gamma, beta))
    ref = _reference(x, gamma, beta)
    assert out.shape == (N, C, H, W)
    assert jnp.allclose(out, ref, atol=1e-4, rtol=1e-4), "fused path mismatch"

    # Tiled two-pass path, forced with a tiny block budget so the grid has several
    # spatial tiles, several lane groups, and a parallel batch axis.
    N2, C2, H2, W2 = 2, 4, 64, 64
    x2 = 3.0 + 2.0 * jax.random.normal(kx2, (N2, C2, H2, W2), dtype=jnp.float32)
    out2 = jax.block_until_ready(
        my_batch_norm_2d(x2, gamma, beta, block_bytes=32 * 1024, force_two_pass=True))
    ref2 = _reference(x2, gamma, beta)
    assert out2.shape == (N2, C2, H2, W2)
    assert jnp.allclose(out2, ref2, atol=1e-4, rtol=1e-4), "two-pass path mismatch"

    print("KERNEL_OK")
</pallas_src>

<mosaic_0001>
module attributes {stable_mosaic.version = 11 : i64} {
  func.func @_fused_kernel(%arg0: i32, %arg1: memref<2x4x256xf32, #tpu.memory_space<vmem>>, %arg2: memref<4x1xf32, #tpu.memory_space<vmem>>, %arg3: memref<4x1xf32, #tpu.memory_space<vmem>>, %arg4: memref<2x4x256xf32, #tpu.memory_space<vmem>>) attributes {dimension_semantics = [#tpu.dimension_semantics<arbitrary>], iteration_bounds = array<i64: 1>, scalar_prefetch = 0 : i64, scratch_operands = 0 : i64, tpu.core_type = #tpu.core_type<tc>, window_params = [{pipeline_mode = #tpu.pipeline_mode<synchronous>, transform_indices = @transform_0, window_bounds = array<i64: 2, 4, 256>}, {pipeline_mode = #tpu.pipeline_mode<synchronous>, transform_indices = @transform_1, window_bounds = array<i64: 4, 1>}, {pipeline_mode = #tpu.pipeline_mode<synchronous>, transform_indices = @transform_2, window_bounds = array<i64: 4, 1>}, {pipeline_mode = #tpu.pipeline_mode<synchronous>, transform_indices = @transform_3, window_bounds = array<i64: 2, 4, 256>}]} {
    %cst = arith.constant 0.000000e+00 : f32
    %0 = vector.broadcast %cst : f32 to vector<4x256xf32>
    %c0_i32 = arith.constant 0 : i32
    %c2_i32 = arith.constant 2 : i32
    %1 = arith.addi %c0_i32, %c2_i32 : i32
    %c1_i32 = arith.constant 1 : i32
    %2 = scf.for %arg5 = %c0_i32 to %1 step %c1_i32 iter_args(%arg6 = %0) -> (vector<4x256xf32>)  : i32 {
      %23 = arith.index_cast %arg5 : i32 to index
      %c0_18 = arith.constant 0 : index
      %c0_19 = arith.constant 0 : index
      %24 = vector.load %arg1[%23, %c0_18, %c0_19] : memref<2x4x256xf32, #tpu.memory_space<vmem>>, vector<1x4x256xf32>
      %25 = vector.shape_cast %24 : vector<1x4x256xf32> to vector<4x256xf32>
      %26 = arith.addf %arg6, %25 : vector<4x256xf32>
      scf.yield %26 : vector<4x256xf32>
    }
    %c2_i32_0 = arith.constant 2 : i32
    %cst_1 = arith.constant dense<0.000000e+00> : vector<4xf32>
    %3 = vector.multi_reduction <add>, %2, %cst_1 [1] : vector<4x256xf32> to vector<4xf32>
    %4 = vector.shape_cast %3 : vector<4xf32> to vector<4x1xf32>
    %cst_2 = arith.constant 0.001953125 : f32
    %5 = vector.broadcast %cst_2 : f32 to vector<4x1xf32>
    %6 = arith.mulf %4, %5 : vector<4x1xf32>
    %cst_3 = arith.constant 0.000000e+00 : f32
    %7 = vector.broadcast %cst_3 : f32 to vector<4x256xf32>
    %c0_i32_4 = arith.constant 0 : i32
    %c2_i32_5 = arith.constant 2 : i32
    %8 = arith.addi %c0_i32_4, %c2_i32_5 : i32
    %c1_i32_6 = arith.constant 1 : i32
    %9 = scf.for %arg5 = %c0_i32_4 to %8 step %c1_i32_6 iter_args(%arg6 = %7) -> (vector<4x256xf32>)  : i32 {
      %23 = arith.index_cast %arg5 : i32 to index
      %c0_18 = arith.constant 0 : index
      %c0_19 = arith.constant 0 : index
      %24 = vector.load %arg1[%23, %c0_18, %c0_19] : memref<2x4x256xf32, #tpu.memory_space<vmem>>, vector<1x4x256xf32>
      %25 = vector.shape_cast %24 : vector<1x4x256xf32> to vector<4x256xf32>
      %26 = vector.broadcast %6 : vector<4x1xf32> to vector<4x256xf32>
      %27 = arith.subf %25, %26 : vector<4x256xf32>
      %28 = arith.mulf %27, %27 : vector<4x256xf32>
      %29 = arith.addf %arg6, %28 : vector<4x256xf32>
      scf.yield %29 : vector<4x256xf32>
    }
    %c2_i32_7 = arith.constant 2 : i32
    %cst_8 = arith.constant dense<0.000000e+00> : vector<4xf32>
    %10 = vector.multi_reduction <add>, %9, %cst_8 [1] : vector<4x256xf32> to vector<4xf32>
    %11 = vector.shape_cast %10 : vector<4xf32> to vector<4x1xf32>
    %cst_9 = arith.constant 0.001953125 : f32
    %12 = vector.broadcast %cst_9 : f32 to vector<4x1xf32>
    %13 = arith.mulf %11, %12 : vector<4x1xf32>
    %cst_10 = arith.constant 9.99999974E-6 : f32
    %14 = vector.broadcast %cst_10 : f32 to vector<4x1xf32>
    %15 = arith.addf %13, %14 : vector<4x1xf32>
    %16 = math.rsqrt %15 : vector<4x1xf32>
    %c0 = arith.constant 0 : index
    %c0_11 = arith.constant 0 : index
    %17 = vector.load %arg2[%c0, %c0_11] : memref<4x1xf32, #tpu.memory_space<vmem>>, vector<4x1xf32>
    %18 = arith.mulf %17, %16 : vector<4x1xf32>
    %c0_12 = arith.constant 0 : index
    %c0_13 = arith.constant 0 : index
    %19 = vector.load %arg3[%c0_12, %c0_13] : memref<4x1xf32, #tpu.memory_space<vmem>>, vector<4x1xf32>
    %20 = arith.mulf %6, %18 : vector<4x1xf32>
    %21 = arith.subf %19, %20 : vector<4x1xf32>
    %c0_i32_14 = arith.constant 0 : i32
    %c2_i32_15 = arith.constant 2 : i32
    %22 = arith.addi %c0_i32_14, %c2_i32_15 : i32
    %c1_i32_16 = arith.constant 1 : i32
    scf.for %arg5 = %c0_i32_14 to %22 step %c1_i32_16  : i32 {
      %c1_i32_18 = arith.constant 1 : i32
      %23 = arith.muli %arg5, %c1_i32_18 : i32
      %c0_i32_19 = arith.constant 0 : i32
      %24 = arith.addi %c0_i32_19, %23 : i32
      %25 = arith.index_cast %24 : i32 to index
      %c0_20 = arith.constant 0 : index
      %c0_21 = arith.constant 0 : index
      %26 = vector.load %arg1[%25, %c0_20, %c0_21] : memref<2x4x256xf32, #tpu.memory_space<vmem>>, vector<1x4x256xf32>
      %27 = vector.shape_cast %26 : vector<1x4x256xf32> to vector<4x256xf32>
      %28 = vector.broadcast %18 : vector<4x1xf32> to vector<4x256xf32>
      %29 = arith.mulf %27, %28 : vector<4x256xf32>
      %30 = vector.broadcast %21 : vector<4x1xf32> to vector<4x256xf32>
      %31 = arith.addf %29, %30 : vector<4x256xf32>
      %32 = arith.index_cast %24 : i32 to index
      %c0_22 = arith.constant 0 : index
      %c0_23 = arith.constant 0 : index
      %33 = vector.load %arg4[%32, %c0_22, %c0_23] : memref<2x4x256xf32, #tpu.memory_space<vmem>>, vector<1x4x256xf32>
      %34 = vector.shape_cast %33 : vector<1x4x256xf32> to vector<4x256xf32>
      %35 = vector.shape_cast %31 : vector<4x256xf32> to vector<1x4x256xf32>
      tpu.vector_store %arg4[%32, %c0_22, %c0_23], %35 {strides = array<i32>} : memref<2x4x256xf32, #tpu.memory_space<vmem>>, vector<1x4x256xf32>,
    }
    %c2_i32_17 = arith.constant 2 : i32
    return
  }
  func.func @transform_0(%arg0: i32) -> (i32, i32, i32) {
    %c0_i32 = arith.constant 0 : i32
    %c0_i32_0 = arith.constant 0 : i32
    %c0_i32_1 = arith.constant 0 : i32
    %c0_i32_2 = arith.constant 0 : i32
    return %c0_i32, %c0_i32_0, %c0_i32_1 : i32, i32, i32
  }
  func.func @transform_1(%arg0: i32) -> (i32, i32) {
    %c0_i32 = arith.constant 0 : i32
    %c0_i32_0 = arith.constant 0 : i32
    %c0_i32_1 = arith.constant 0 : i32
    return %c0_i32, %c0_i32_0 : i32, i32
  }
  func.func @transform_2(%arg0: i32) -> (i32, i32) {
    %c0_i32 = arith.constant 0 : i32
    %c0_i32_0 = arith.constant 0 : i32
    %c0_i32_1 = arith.constant 0 : i32
    return %c0_i32, %c0_i32_0 : i32, i32
  }
  func.func @transform_3(%arg0: i32) -> (i32, i32, i32) {
    %c0_i32 = arith.constant 0 : i32
    %c0_i32_0 = arith.constant 0 : i32
    %c0_i32_1 = arith.constant 0 : i32
    %c0_i32_2 = arith.constant 0 : i32
    return %c0_i32, %c0_i32_0, %c0_i32_1 : i32, i32, i32
  }
}

</mosaic_0001>

<bundles_post_ra>
// kernel: tpu_custom_call.1
= control target key start
LH: loop header
LB: loop body
LE: loop exit
PB: predicated region body
PF: predicated region fallthrough
CT: control target
= control target key end

     0   :  { %8 = vsyncpa [#allocation3], 0  ;;  %s389_s0 = inlined_call_operand.hbm [shape: f32[2,4,256], index: 0, kind: input, shape index: {}]   ;;  %s390_s1 = inlined_call_operand.vmem [shape: f32[4,1], index: 1, kind: input, shape index: {}]   ;;  %s391_s2 = inlined_call_operand.vmem [shape: f32[4,1], index: 2, kind: input, shape index: {}]   ;;  %s392_s3 = inlined_call_operand.hbm [shape: f32[2,4,256], index: 3, kind: output, shape index: {}]  }
   0x1   :  { %9 = vsyncpa [#allocation4], 0  ;;  %s323_s12 = smov [#allocation2]   ;;  %s235_s16 = scalar_lea.hbm %s389_s0, 256 }
   0x2   :  { %s15_s13 = sshll.u32 %s323_s12, 4  ;;  %p236_p0 = scmp.ne.s32.totalorder %s389_s0, %s235_s16  ;;  %s16_s13 = int_to_ptr.vmem [resolvable:$true] %s15_s13 }
   0x3   :  { %p239_p1 = scmp.lt.u32.totalorder %s235_s16, %s389_s0 }
   0x5   :  { %p241_p2 = pnand %p239_p1, %p236_p0 }
   0x7   :  { %244 = shalt.err (!%p241_p2)
}
   0x8   :  { %s245_s21 = scalar_lea.vmem %s16_s13, 256  ;;  %p250_p4 = scmp.lt.s32.totalorder %s16_s13, %s16_s13 }
   0x9   :  { %p246_p3 = scmp.ne.s32.totalorder %s16_s13, %s245_s21  ;;  %p251_p5 = scmp.lt.s32.totalorder %s245_s21, %s245_s21 }
   0xb   :  { %p252_p6 = por %p251_p5, %p250_p4 }
   0xd   :  { %p253_p7 = pnand %p252_p6, %p246_p3 }
   0xf   :  { %256 = shalt.err (!%p253_p7)
}
  0x10   :  { %s324_s22 = smov 128   ;;  %s325_s23 = smov 8  }
  0x11   :  { %21 = dma.hbm_to_vmem [thread:$0]  %s389_s0, 256, %s16_s13, [#allocation3], %s324_s22, %s324_s22, %s325_s23  }
  0x12   :  { %299 = dma.done.wait [#allocation3], 256  }
  0x13   :  { %300 = vsyncadd [#allocation3], 4294967040  ;;  %v303_v0 = vmov 0.0   ;;  %s307_s26 = smov 0  }
  0x14 LB: > { %s182_s27 = sshll.u32 %s309_s26, 3  ;;  %s34_s26 = sadd.s32 1, %s309_s26   ;;  %s309_s26 = sphi %s307_s26, %s34_s26   ;;  %v305_v0 = vphi %v303_v0, %v304_v0  }
  0x15   : > { %s38_s28 = scalar_lea.vmem [#allocation2], %s182_s27  ;;  %p31_p8 = scmp.ge.s32.totalorder %s34_s26, 2  }
  0x16   : > { %v39_v1 = vld [vmem:[%s38_s28] sm:$0xff]  ;;  %vm44_vm0 = vcmask (%p31_p8), 1043456   ;;  %v311_v9 = vmov (%p31_p8), 0.0   ;;  %s315_s0 = smov (%p31_p8), 0  }
  0x17   : > { %v40_v2 = vadd.f32 %v305_v0, %v39_v1   ;;  %33 = sbr.rel (!%p31_p8) target bundleno = 20 (0x14), region = 61 }
  0x19   : > { %v304_v0 = vmov %v40_v2   ;;  %v42_v3 = vcombine.high (%p31_p8), %v40_v2, %v40_v2  ;;  %v45_v4 = vsel (%p31_p8), %vm44_vm0, %v40_v2, 0.0 }
  0x1b   :  { %v46_v5 = vsel (%p31_p8), %vm44_vm0, %v42_v3, 0.0 }
  0x1c   :  { %v47_v6 = vadd.f32 (%p31_p8), %v46_v5, %v45_v4 }
  0x1e   :  { %48 = vadd.xlane.f32.xlu0 %v47_v6 }
  0xab   :  { %v49_v7 = vpop.xlane.xlu0 %48 }
  0xac   :  { %v50_v8 = vmul.f32 0.001953125, %v49_v7 }
  0xad LB: > { %v66_v10 = vlaneseq  ;;  %v326_v11 = vmov 839922192   ;;  %s183_s29 = sshll.u32 %s317_s0, 3  ;;  %s56_s0 = sadd.s32 1, %s317_s0   ;;  %s317_s0 = sphi %s315_s0, %s56_s0   ;;  %v313_v9 = vphi %v311_v9, %v312_v9  }
  0xae   : > { %v64_v12 = vunpack.c.l.s4 %v326_v11  ;;  %s60_s30 = scalar_lea.vmem [#allocation2], %s183_s29  ;;  %p53_p9 = scmp.ge.s32.totalorder %s56_s0, 2  }
  0xaf   : > { %v67_v13 = vshrl.u32 %v66_v10, 7  ;;  %v61_v16 = vld [vmem:[%s60_s30] sm:$0xff]  ;;  %s319_s8 = smov (%p53_p9), 0  }
  0xb0   : > { %v65_v14 = vunpack.c.0.s8 %v64_v12  ;;  %v85_v28 = vld [vmem:[%s390_s1] sm:$0xf] (%p53_p9) }
  0xb1   :  { %v87_v31 = vld [vmem:[%s391_s2] sm:$0xf] (%p53_p9) }
  0xb2   : > { %v68_v15 = vsub.s32 %v65_v14, %v67_v13 }
  0xb4   : > { %v69_v17 = vrot.slane %v50_v8, %v68_v15 }
  0xb6   : > { %v71_v18 = vsub.f32 %v61_v16, %v69_v17  ;;  %55 = sbr.rel (!%p53_p9) target bundleno = 173 (0xad), region = 72 }
  0xb8   : > { %v72_v19 = vmul.f32 %v71_v18, %v71_v18 }
  0xba   : > { %v73_v20 = vadd.f32 %v313_v9, %v72_v19  }
  0xbc   : > { %v312_v9 = vmov %v73_v20   ;;  %v75_v21 = vcombine.high (%p53_p9), %v73_v20, %v73_v20  ;;  %v77_v22 = vsel (%p53_p9), %vm44_vm0, %v73_v20, 0.0 }
  0xbe   :  { %v78_v23 = vsel %vm44_vm0, %v75_v21, 0.0 }
  0xbf   :  { %v79_v24 = vadd.f32 %v78_v23, %v77_v22 }
  0xc1   :  { %80 = vadd.xlane.f32.xlu0 %v79_v24 }
 0x14e   :  { %v81_v25 = vpop.xlane.xlu0 %80 }
 0x14f   :  { %v82_v26 = vmul.f32 0.001953125, %v81_v25 }
 0x151   :  { %v83_v27 = vadd.f32 1e-05, %v82_v26 }
 0x153   :  { %232 = vrsqrt.f32 %v83_v27 }
 0x15d   :  { %v233_v29 = vpop.eup %232 }
 0x15e   :  { %v86_v30 = vmul.f32 %v233_v29, %v85_v28 }
 0x160   :  { %v88_v32 = vmul.f32 %v86_v30, %v50_v8 }
 0x162   :  { %v89_v33 = vsub.f32 %v87_v31, %v88_v32 }
 0x163 LB: > { %v327_v34 = vmov 0   ;;  %s184_s9 = sshll.u32 %s321_s8, 3  ;;  %s95_s8 = sadd.s32 1, %s321_s8   ;;  %s321_s8 = sphi %s319_s8, %s95_s8  }
 0x164   : > { %234 = vset.pattern.permute.xlu0 %v327_v34  ;;  %s98_s1 = scalar_lea.vmem [#allocation2], %s184_s9  ;;  %s127_s2 = scalar_lea.vmem [#allocation5], %s184_s9 }
 0x165   : > { %102 = vperm.xlu0 %234, %v86_v30   ;;  %v99_v37 = vld [vmem:[%s98_s1] sm:$0xff]  ;;  %p92_p10 = scmp.ge.s32.totalorder %s95_s8, 2  }
 0x166   :  { %s328_s10 = smov (%p92_p10), [#allocation5]  }
 0x167   :  { %s134_s11 = sshll.u32 (%p92_p10), %s328_s10, 4  ;;  %s135_s11 = int_to_ptr.vmem [resolvable:$true] %s134_s11 }
 0x168   :  { %s257_s12 = scalar_lea.vmem (%p92_p10), %s135_s11, 256  ;;  %p262_p12 = scmp.lt.s32.totalorder (%p92_p10), %s135_s11, %s135_s11 }
 0x169   : > { %115 = vperm.xlu0 %234, %v89_v33   ;;  %p258_p11 = scmp.ne.s32.totalorder (%p92_p10), %s135_s11, %s257_s12  ;;  %p263_p13 = scmp.lt.s32.totalorder (%p92_p10), %s257_s12, %s257_s12 }
 0x16b   :  { %p264_p0 = por (%p92_p10), %p263_p13, %p262_p12 }
 0x16d   :  { %p265_p1 = pnand (%p92_p10), %p264_p0, %p258_p11 }
 0x1e4   : > { %v103_v35 = vpop.permute.xlu0 %102 }
 0x1e5   : > { %v110_v36 = vrot.slane %v103_v35, %v68_v15 }
 0x1e7   : > { %v112_v39 = vmul.f32 %v110_v36, %v99_v37  ;;  %94 = sbr.rel (!%p92_p10) target bundleno = 355 (0x163), region = 83 }
 0x1e8   : > { %v116_v38 = vpop.permute.xlu0 %115 }
 0x1e9   : > { %v123_v40 = vrot.slane %v116_v38, %v68_v15 }
 0x1eb   : > { %v125_v41 = vadd.f32 %v123_v40, %v112_v39 }
 0x1ed   : > { %128 = vst [vmem:[%s127_s2] sm:$0xff] %v125_v41 }
 0x1ee   :  { %268 = shalt.err (!%p265_p1)
}
 0x1ef   :  { %s269_s15 = scalar_lea.hbm %s392_s3, 256 }
 0x1f0   :  { %p270_p2 = scmp.ne.s32.totalorder %s392_s3, %s269_s15  ;;  %p273_p3 = scmp.lt.u32.totalorder %s269_s15, %s392_s3 }
 0x1f2   :  { %p275_p4 = pnand %p273_p3, %p270_p2 }
 0x1f4   :  { %278 = shalt.err (!%p275_p4)
}
 0x1f5   :  { %140 = dma.vmem_to_hbm [thread:$0]  %s135_s11, 256, %s392_s3, [#allocation4], %s324_s22, %s324_s22, %s325_s23  }
 0x1f6   :  { %301 = dma.done.wait [#allocation4], 256  }
 0x1f7   :  { %302 = vsyncadd [#allocation4], 4294967040 }
 0x1f8   :  { %144 = vsyncpa [#allocation3], 1 }
 0x1f9   :  { %145 = vsyncpa [#allocation4], 1 }

</bundles_post_ra>
